<compile_context>
chip_gen: v7x
topology: tpu7x:2x2x1
jax: 0.10.0
libtpu: 0.0.40
codegen_flags: <defaults>
</compile_context>

<pallas_src>
import jax
import jax.numpy as jnp
from jax.experimental import pallas as pl
from jax.experimental.pallas import tpu as pltpu

F_IN, F_HID, F_OUT = 4, 6, 3


def _nn_softmax_kernel(w1_ref, b1_ref, w2_ref, b2_ref, xt_ref, ot_ref):
    """One batch tile.

    xt_ref: (F_IN, rows, 128) f32 VMEM   (batch on lanes, lane-dense planes)
    ot_ref: (F_OUT, rows, 128) f32 VMEM
    w*/b* : folded weights, resident in SMEM (scalar reads).
    """
    x = [xt_ref[k] for k in range(F_IN)]  # 4 dense (rows, 128) planes

    # Hidden layer with the sigmoid affine pre-folded into (w1', b1'):
    #   t_j = tanh(w1'.x + b1')        (VPU FMAs + EUP tanh)
    t = []
    for j in range(F_HID):
        acc = x[0] * w1_ref[0, j]
        for k in range(1, F_IN):
            acc = acc + x[k] * w1_ref[k, j]
        t.append(jnp.tanh(acc + b1_ref[j]))

    # Output logits with the 0.5*t+0.5 affine folded into (w2', b2'):
    #   z_c = sum_j w2'[j,c]*t_j + b2'[c]
    z = []
    for c in range(F_OUT):
        acc = t[0] * w2_ref[0, c]
        for j in range(1, F_HID):
            acc = acc + t[j] * w2_ref[j, c]
        z.append(acc + b2_ref[c])

    # Softmax across the 3 class planes (torch softmax(dim=1) on the (B,3) output).
    # Explicit maximum/add chain keeps everything on the VPU (no XLU reduction);
    # exp goes to the EUP.  approx=False keeps 1e-5 parity with the reference.
    m = jnp.maximum(jnp.maximum(z[0], z[1]), z[2])
    e = [jnp.exp(zc - m) for zc in z]
    denom = e[0] + e[1] + e[2]
    inv = pl.reciprocal(denom, approx=False)
    for c in range(F_OUT):
        ot_ref[c, :, :] = e[c] * inv  # full-width lane-dense stores


def _fold_params(w1, b1, w2, b2):
    """Fold sigmoid(z) = 0.5*tanh(0.5*z) + 0.5 into the layer weights (host-side, one-time)."""
    w1p = 0.5 * w1.astype(jnp.float32)
    b1p = 0.5 * b1.astype(jnp.float32)
    w2p = 0.5 * w2.astype(jnp.float32)
    b2p = b2.astype(jnp.float32) + 0.5 * jnp.sum(w2.astype(jnp.float32), axis=0)
    return w1p, b1p, w2p, b2p


def _choose_block_rows(n_rows, block_rows):
    """Pick a batch-row tile: multiple of 8 (or the full extent), >=2 grid steps when possible."""
    block_rows = max(8, (block_rows // 8) * 8)
    if n_rows <= block_rows:
        if n_rows >= 16:
            return max(8, 8 * (n_rows // 16))  # ~half the rows -> both v7x TCs get work
        return n_rows                           # single full-extent block (tiny batches)
    return block_rows


def nn_softmax_forward_planes(x_planes, w1, b1, w2, b2, *, block_rows=1024):
    """Core Pallas call on the lane-dense layout (no wrapper transposes).

    x_planes: (F_IN, R, 128) f32 with x_planes[k, r, l] = x[r*128 + l, k].
    Returns (F_OUT, R, 128) softmax probabilities in the same layout.
    """
    fin, R, lanes = x_planes.shape
    assert fin == F_IN and lanes == 128
    br = _choose_block_rows(R, block_rows)
    assert R % br == 0, "pad the row axis to a multiple of the block size"
    assert br <= 4096  # keeps the double-buffered working set < ~30 MiB (v7x-safe)

    w1p, b1p, w2p, b2p = _fold_params(w1, b1, w2, b2)

    tile_bytes = (F_IN + F_OUT) * br * 128 * 4
    vmem_limit = min(max(2 * tile_bytes + (2 << 20), 16 << 20), 32 << 20)

    smem = pl.BlockSpec(memory_space=pltpu.MemorySpace.SMEM)
    return pl.pallas_call(
        _nn_softmax_kernel,
        out_shape=jax.ShapeDtypeStruct((F_OUT, R, 128), jnp.float32),
        grid=(R // br,),
        in_specs=[
            smem,                                            # w1' (4, 6)
            smem,                                            # b1' (6,)
            smem,                                            # w2' (6, 3)
            smem,                                            # b2' (3,)
            pl.BlockSpec((F_IN, br, 128), lambda i: (0, i, 0)),   # x tile
        ],
        out_specs=pl.BlockSpec((F_OUT, br, 128), lambda i: (0, i, 0)),
        compiler_params=pltpu.CompilerParams(
            dimension_semantics=("parallel",),  # shard batch tiles across TCs on v7x
            vmem_limit_bytes=vmem_limit,
        ),
    )(w1p, b1p, w2p, b2p, x_planes)


def nn_softmax_forward(x, w1, b1, w2, b2, *, block_rows=1024):
    """Convenience wrapper: x (B, 4) f32 -> (B, 3) f32 softmax probabilities.

    All layout plumbing (transpose / pad / reshape to lane-dense planes) happens
    here; the kernel itself only ever sees dense 8x128-aligned tiles.
    """
    B = x.shape[0]
    x = x.astype(jnp.float32)
    R = (B + 127) // 128
    br = _choose_block_rows(R, block_rows)
    Rp = ((R + br - 1) // br) * br
    Bp = Rp * 128

    xt = x.T                                    # (4, B)
    if Bp != B:
        xt = jnp.pad(xt, ((0, 0), (0, Bp - B)))  # zero tail lanes (sliced off below)
    x_planes = xt.reshape(F_IN, Rp, 128)

    out_planes = nn_softmax_forward_planes(x_planes, w1, b1, w2, b2, block_rows=br)
    return out_planes.reshape(F_OUT, Bp)[:, :B].T  # back to (B, 3)


def init_params(key):
    """Deterministic PyTorch-like init: U(-1/sqrt(fan_in), 1/sqrt(fan_in)); weights stored (in, out)."""
    k1, k2, k3, k4 = jax.random.split(key, 4)
    bound1 = 1.0 / jnp.sqrt(jnp.float32(F_IN))
    bound2 = 1.0 / jnp.sqrt(jnp.float32(F_HID))
    w1 = jax.random.uniform(k1, (F_IN, F_HID), jnp.float32, -bound1, bound1)
    b1 = jax.random.uniform(k2, (F_HID,), jnp.float32, -bound1, bound1)
    w2 = jax.random.uniform(k3, (F_HID, F_OUT), jnp.float32, -bound2, bound2)
    b2 = jax.random.uniform(k4, (F_OUT,), jnp.float32, -bound2, bound2)
    return w1, b1, w2, b2


def reference_forward(x, w1, b1, w2, b2):
    h = jax.nn.sigmoid(x @ w1 + b1)
    return jax.nn.softmax(h @ w2 + b2, axis=1)


# TODO(synk): the module's backward() training loop (CrossEntropyLoss + SGD) is host-side
# training code, not part of the forward pass, and is not implemented as a kernel.

if __name__ == "__main__":
    key = jax.random.PRNGKey(0)
    kx, kp = jax.random.split(key)
    w1, b1, w2, b2 = init_params(kp)

    # Small shape consistent with the module: a batch of 8 feature-4 rows.
    x_small = jax.random.normal(kx, (8, F_IN), dtype=jnp.float32)
    out = jax.block_until_ready(nn_softmax_forward(x_small, w1, b1, w2, b2))
    ref = reference_forward(x_small, w1, b1, w2, b2)
    assert out.shape == (8, F_OUT)
    assert jnp.allclose(out, ref, atol=1e-5, rtol=1e-5)
    assert jnp.allclose(jnp.sum(out, axis=1), jnp.ones((8,)), atol=1e-5)

    # Ragged batch (zero-padded tail lanes, sliced off after the kernel).
    x_med = jax.random.normal(kx, (300, F_IN), dtype=jnp.float32)
    out_med = jax.block_until_ready(nn_softmax_forward(x_med, w1, b1, w2, b2))
    ref_med = reference_forward(x_med, w1, b1, w2, b2)
    assert out_med.shape == (300, F_OUT)
    assert jnp.allclose(out_med, ref_med, atol=1e-5, rtol=1e-5)

    # Multi-step grid with dense 8x128-aligned blocks (exercises pipelining + megacore split).
    x_big = jax.random.normal(kx, (6144, F_IN), dtype=jnp.float32)
    out_big = jax.block_until_ready(
        nn_softmax_forward(x_big, w1, b1, w2, b2, block_rows=16)
    )
    ref_big = reference_forward(x_big, w1, b1, w2, b2)
    assert out_big.shape == (6144, F_OUT)
    assert jnp.allclose(out_big, ref_big, atol=1e-5, rtol=1e-5)

    print("KERNEL_OK")
</pallas_src>

<mosaic_0001>
module attributes {stable_mosaic.version = 11 : i64} {
  func.func @_nn_softmax_kernel(%arg0: i32, %arg1: memref<4x6xf32, #tpu.memory_space<smem>>, %arg2: memref<6xf32, #tpu.memory_space<smem>>, %arg3: memref<6x3xf32, #tpu.memory_space<smem>>, %arg4: memref<3xf32, #tpu.memory_space<smem>>, %arg5: memref<4x1x128xf32, #tpu.memory_space<vmem>>, %arg6: memref<3x1x128xf32, #tpu.memory_space<vmem>>) attributes {dimension_semantics = [#tpu.dimension_semantics<parallel>], iteration_bounds = array<i64: 1>, scalar_prefetch = 0 : i64, scratch_operands = 0 : i64, tpu.core_type = #tpu.core_type<tc>, window_params = [{transform_indices = @transform_0, window_bounds = array<i64: 4, 6>}, {transform_indices = @transform_1, window_bounds = array<i64: 6>}, {transform_indices = @transform_2, window_bounds = array<i64: 6, 3>}, {transform_indices = @transform_3, window_bounds = array<i64: 3>}, {transform_indices = @transform_4, window_bounds = array<i64: 4, 1, 128>}, {transform_indices = @transform_5, window_bounds = array<i64: 3, 1, 128>}]} {
    %c0 = arith.constant 0 : index
    %c0_0 = arith.constant 0 : index
    %c0_1 = arith.constant 0 : index
    %0 = vector.load %arg5[%c0, %c0_0, %c0_1] : memref<4x1x128xf32, #tpu.memory_space<vmem>>, vector<1x1x128xf32>
    %1 = vector.shape_cast %0 : vector<1x1x128xf32> to vector<1x128xf32>
    %c1 = arith.constant 1 : index
    %c0_2 = arith.constant 0 : index
    %c0_3 = arith.constant 0 : index
    %2 = vector.load %arg5[%c1, %c0_2, %c0_3] : memref<4x1x128xf32, #tpu.memory_space<vmem>>, vector<1x1x128xf32>
    %3 = vector.shape_cast %2 : vector<1x1x128xf32> to vector<1x128xf32>
    %c2 = arith.constant 2 : index
    %c0_4 = arith.constant 0 : index
    %c0_5 = arith.constant 0 : index
    %4 = vector.load %arg5[%c2, %c0_4, %c0_5] : memref<4x1x128xf32, #tpu.memory_space<vmem>>, vector<1x1x128xf32>
    %5 = vector.shape_cast %4 : vector<1x1x128xf32> to vector<1x128xf32>
    %c3 = arith.constant 3 : index
    %c0_6 = arith.constant 0 : index
    %c0_7 = arith.constant 0 : index
    %6 = vector.load %arg5[%c3, %c0_6, %c0_7] : memref<4x1x128xf32, #tpu.memory_space<vmem>>, vector<1x1x128xf32>
    %7 = vector.shape_cast %6 : vector<1x1x128xf32> to vector<1x128xf32>
    %c0_8 = arith.constant 0 : index
    %c0_9 = arith.constant 0 : index
    %8 = memref.load %arg1[%c0_8, %c0_9] : memref<4x6xf32, #tpu.memory_space<smem>>
    %9 = vector.broadcast %8 : f32 to vector<1x128xf32>
    %10 = arith.mulf %1, %9 : vector<1x128xf32>
    %c1_10 = arith.constant 1 : index
    %c0_11 = arith.constant 0 : index
    %11 = memref.load %arg1[%c1_10, %c0_11] : memref<4x6xf32, #tpu.memory_space<smem>>
    %12 = vector.broadcast %11 : f32 to vector<1x128xf32>
    %13 = arith.mulf %3, %12 : vector<1x128xf32>
    %14 = arith.addf %10, %13 : vector<1x128xf32>
    %c2_12 = arith.constant 2 : index
    %c0_13 = arith.constant 0 : index
    %15 = memref.load %arg1[%c2_12, %c0_13] : memref<4x6xf32, #tpu.memory_space<smem>>
    %16 = vector.broadcast %15 : f32 to vector<1x128xf32>
    %17 = arith.mulf %5, %16 : vector<1x128xf32>
    %18 = arith.addf %14, %17 : vector<1x128xf32>
    %c3_14 = arith.constant 3 : index
    %c0_15 = arith.constant 0 : index
    %19 = memref.load %arg1[%c3_14, %c0_15] : memref<4x6xf32, #tpu.memory_space<smem>>
    %20 = vector.broadcast %19 : f32 to vector<1x128xf32>
    %21 = arith.mulf %7, %20 : vector<1x128xf32>
    %22 = arith.addf %18, %21 : vector<1x128xf32>
    %c0_16 = arith.constant 0 : index
    %23 = memref.load %arg2[%c0_16] : memref<6xf32, #tpu.memory_space<smem>>
    %24 = vector.broadcast %23 : f32 to vector<1x128xf32>
    %25 = arith.addf %22, %24 : vector<1x128xf32>
    %26 = math.tanh %25 : vector<1x128xf32>
    %c0_17 = arith.constant 0 : index
    %c1_18 = arith.constant 1 : index
    %27 = memref.load %arg1[%c0_17, %c1_18] : memref<4x6xf32, #tpu.memory_space<smem>>
    %28 = vector.broadcast %27 : f32 to vector<1x128xf32>
    %29 = arith.mulf %1, %28 : vector<1x128xf32>
    %c1_19 = arith.constant 1 : index
    %c1_20 = arith.constant 1 : index
    %30 = memref.load %arg1[%c1_19, %c1_20] : memref<4x6xf32, #tpu.memory_space<smem>>
    %31 = vector.broadcast %30 : f32 to vector<1x128xf32>
    %32 = arith.mulf %3, %31 : vector<1x128xf32>
    %33 = arith.addf %29, %32 : vector<1x128xf32>
    %c2_21 = arith.constant 2 : index
    %c1_22 = arith.constant 1 : index
    %34 = memref.load %arg1[%c2_21, %c1_22] : memref<4x6xf32, #tpu.memory_space<smem>>
    %35 = vector.broadcast %34 : f32 to vector<1x128xf32>
    %36 = arith.mulf %5, %35 : vector<1x128xf32>
    %37 = arith.addf %33, %36 : vector<1x128xf32>
    %c3_23 = arith.constant 3 : index
    %c1_24 = arith.constant 1 : index
    %38 = memref.load %arg1[%c3_23, %c1_24] : memref<4x6xf32, #tpu.memory_space<smem>>
    %39 = vector.broadcast %38 : f32 to vector<1x128xf32>
    %40 = arith.mulf %7, %39 : vector<1x128xf32>
    %41 = arith.addf %37, %40 : vector<1x128xf32>
    %c1_25 = arith.constant 1 : index
    %42 = memref.load %arg2[%c1_25] : memref<6xf32, #tpu.memory_space<smem>>
    %43 = vector.broadcast %42 : f32 to vector<1x128xf32>
    %44 = arith.addf %41, %43 : vector<1x128xf32>
    %45 = math.tanh %44 : vector<1x128xf32>
    %c0_26 = arith.constant 0 : index
    %c2_27 = arith.constant 2 : index
    %46 = memref.load %arg1[%c0_26, %c2_27] : memref<4x6xf32, #tpu.memory_space<smem>>
    %47 = vector.broadcast %46 : f32 to vector<1x128xf32>
    %48 = arith.mulf %1, %47 : vector<1x128xf32>
    %c1_28 = arith.constant 1 : index
    %c2_29 = arith.constant 2 : index
    %49 = memref.load %arg1[%c1_28, %c2_29] : memref<4x6xf32, #tpu.memory_space<smem>>
    %50 = vector.broadcast %49 : f32 to vector<1x128xf32>
    %51 = arith.mulf %3, %50 : vector<1x128xf32>
    %52 = arith.addf %48, %51 : vector<1x128xf32>
    %c2_30 = arith.constant 2 : index
    %c2_31 = arith.constant 2 : index
    %53 = memref.load %arg1[%c2_30, %c2_31] : memref<4x6xf32, #tpu.memory_space<smem>>
    %54 = vector.broadcast %53 : f32 to vector<1x128xf32>
    %55 = arith.mulf %5, %54 : vector<1x128xf32>
    %56 = arith.addf %52, %55 : vector<1x128xf32>
    %c3_32 = arith.constant 3 : index
    %c2_33 = arith.constant 2 : index
    %57 = memref.load %arg1[%c3_32, %c2_33] : memref<4x6xf32, #tpu.memory_space<smem>>
    %58 = vector.broadcast %57 : f32 to vector<1x128xf32>
    %59 = arith.mulf %7, %58 : vector<1x128xf32>
    %60 = arith.addf %56, %59 : vector<1x128xf32>
    %c2_34 = arith.constant 2 : index
    %61 = memref.load %arg2[%c2_34] : memref<6xf32, #tpu.memory_space<smem>>
    %62 = vector.broadcast %61 : f32 to vector<1x128xf32>
    %63 = arith.addf %60, %62 : vector<1x128xf32>
    %64 = math.tanh %63 : vector<1x128xf32>
    %c0_35 = arith.constant 0 : index
    %c3_36 = arith.constant 3 : index
    %65 = memref.load %arg1[%c0_35, %c3_36] : memref<4x6xf32, #tpu.memory_space<smem>>
    %66 = vector.broadcast %65 : f32 to vector<1x128xf32>
    %67 = arith.mulf %1, %66 : vector<1x128xf32>
    %c1_37 = arith.constant 1 : index
    %c3_38 = arith.constant 3 : index
    %68 = memref.load %arg1[%c1_37, %c3_38] : memref<4x6xf32, #tpu.memory_space<smem>>
    %69 = vector.broadcast %68 : f32 to vector<1x128xf32>
    %70 = arith.mulf %3, %69 : vector<1x128xf32>
    %71 = arith.addf %67, %70 : vector<1x128xf32>
    %c2_39 = arith.constant 2 : index
    %c3_40 = arith.constant 3 : index
    %72 = memref.load %arg1[%c2_39, %c3_40] : memref<4x6xf32, #tpu.memory_space<smem>>
    %73 = vector.broadcast %72 : f32 to vector<1x128xf32>
    %74 = arith.mulf %5, %73 : vector<1x128xf32>
    %75 = arith.addf %71, %74 : vector<1x128xf32>
    %c3_41 = arith.constant 3 : index
    %c3_42 = arith.constant 3 : index
    %76 = memref.load %arg1[%c3_41, %c3_42] : memref<4x6xf32, #tpu.memory_space<smem>>
    %77 = vector.broadcast %76 : f32 to vector<1x128xf32>
    %78 = arith.mulf %7, %77 : vector<1x128xf32>
    %79 = arith.addf %75, %78 : vector<1x128xf32>
    %c3_43 = arith.constant 3 : index
    %80 = memref.load %arg2[%c3_43] : memref<6xf32, #tpu.memory_space<smem>>
    %81 = vector.broadcast %80 : f32 to vector<1x128xf32>
    %82 = arith.addf %79, %81 : vector<1x128xf32>
    %83 = math.tanh %82 : vector<1x128xf32>
    %c0_44 = arith.constant 0 : index
    %c4 = arith.constant 4 : index
    %84 = memref.load %arg1[%c0_44, %c4] : memref<4x6xf32, #tpu.memory_space<smem>>
    %85 = vector.broadcast %84 : f32 to vector<1x128xf32>
    %86 = arith.mulf %1, %85 : vector<1x128xf32>
    %c1_45 = arith.constant 1 : index
    %c4_46 = arith.constant 4 : index
    %87 = memref.load %arg1[%c1_45, %c4_46] : memref<4x6xf32, #tpu.memory_space<smem>>
    %88 = vector.broadcast %87 : f32 to vector<1x128xf32>
    %89 = arith.mulf %3, %88 : vector<1x128xf32>
    %90 = arith.addf %86, %89 : vector<1x128xf32>
    %c2_47 = arith.constant 2 : index
    %c4_48 = arith.constant 4 : index
    %91 = memref.load %arg1[%c2_47, %c4_48] : memref<4x6xf32, #tpu.memory_space<smem>>
    %92 = vector.broadcast %91 : f32 to vector<1x128xf32>
    %93 = arith.mulf %5, %92 : vector<1x128xf32>
    %94 = arith.addf %90, %93 : vector<1x128xf32>
    %c3_49 = arith.constant 3 : index
    %c4_50 = arith.constant 4 : index
    %95 = memref.load %arg1[%c3_49, %c4_50] : memref<4x6xf32, #tpu.memory_space<smem>>
    %96 = vector.broadcast %95 : f32 to vector<1x128xf32>
    %97 = arith.mulf %7, %96 : vector<1x128xf32>
    %98 = arith.addf %94, %97 : vector<1x128xf32>
    %c4_51 = arith.constant 4 : index
    %99 = memref.load %arg2[%c4_51] : memref<6xf32, #tpu.memory_space<smem>>
    %100 = vector.broadcast %99 : f32 to vector<1x128xf32>
    %101 = arith.addf %98, %100 : vector<1x128xf32>
    %102 = math.tanh %101 : vector<1x128xf32>
    %c0_52 = arith.constant 0 : index
    %c5 = arith.constant 5 : index
    %103 = memref.load %arg1[%c0_52, %c5] : memref<4x6xf32, #tpu.memory_space<smem>>
    %104 = vector.broadcast %103 : f32 to vector<1x128xf32>
    %105 = arith.mulf %1, %104 : vector<1x128xf32>
    %c1_53 = arith.constant 1 : index
    %c5_54 = arith.constant 5 : index
    %106 = memref.load %arg1[%c1_53, %c5_54] : memref<4x6xf32, #tpu.memory_space<smem>>
    %107 = vector.broadcast %106 : f32 to vector<1x128xf32>
    %108 = arith.mulf %3, %107 : vector<1x128xf32>
    %109 = arith.addf %105, %108 : vector<1x128xf32>
    %c2_55 = arith.constant 2 : index
    %c5_56 = arith.constant 5 : index
    %110 = memref.load %arg1[%c2_55, %c5_56] : memref<4x6xf32, #tpu.memory_space<smem>>
    %111 = vector.broadcast %110 : f32 to vector<1x128xf32>
    %112 = arith.mulf %5, %111 : vector<1x128xf32>
    %113 = arith.addf %109, %112 : vector<1x128xf32>
    %c3_57 = arith.constant 3 : index
    %c5_58 = arith.constant 5 : index
    %114 = memref.load %arg1[%c3_57, %c5_58] : memref<4x6xf32, #tpu.memory_space<smem>>
    %115 = vector.broadcast %114 : f32 to vector<1x128xf32>
    %116 = arith.mulf %7, %115 : vector<1x128xf32>
    %117 = arith.addf %113, %116 : vector<1x128xf32>
    %c5_59 = arith.constant 5 : index
    %118 = memref.load %arg2[%c5_59] : memref<6xf32, #tpu.memory_space<smem>>
    %119 = vector.broadcast %118 : f32 to vector<1x128xf32>
    %120 = arith.addf %117, %119 : vector<1x128xf32>
    %121 = math.tanh %120 : vector<1x128xf32>
    %c0_60 = arith.constant 0 : index
    %c0_61 = arith.constant 0 : index
    %122 = memref.load %arg3[%c0_60, %c0_61] : memref<6x3xf32, #tpu.memory_space<smem>>
    %123 = vector.broadcast %122 : f32 to vector<1x128xf32>
    %124 = arith.mulf %26, %123 : vector<1x128xf32>
    %c1_62 = arith.constant 1 : index
    %c0_63 = arith.constant 0 : index
    %125 = memref.load %arg3[%c1_62, %c0_63] : memref<6x3xf32, #tpu.memory_space<smem>>
    %126 = vector.broadcast %125 : f32 to vector<1x128xf32>
    %127 = arith.mulf %45, %126 : vector<1x128xf32>
    %128 = arith.addf %124, %127 : vector<1x128xf32>
    %c2_64 = arith.constant 2 : index
    %c0_65 = arith.constant 0 : index
    %129 = memref.load %arg3[%c2_64, %c0_65] : memref<6x3xf32, #tpu.memory_space<smem>>
    %130 = vector.broadcast %129 : f32 to vector<1x128xf32>
    %131 = arith.mulf %64, %130 : vector<1x128xf32>
    %132 = arith.addf %128, %131 : vector<1x128xf32>
    %c3_66 = arith.constant 3 : index
    %c0_67 = arith.constant 0 : index
    %133 = memref.load %arg3[%c3_66, %c0_67] : memref<6x3xf32, #tpu.memory_space<smem>>
    %134 = vector.broadcast %133 : f32 to vector<1x128xf32>
    %135 = arith.mulf %83, %134 : vector<1x128xf32>
    %136 = arith.addf %132, %135 : vector<1x128xf32>
    %c4_68 = arith.constant 4 : index
    %c0_69 = arith.constant 0 : index
    %137 = memref.load %arg3[%c4_68, %c0_69] : memref<6x3xf32, #tpu.memory_space<smem>>
    %138 = vector.broadcast %137 : f32 to vector<1x128xf32>
    %139 = arith.mulf %102, %138 : vector<1x128xf32>
    %140 = arith.addf %136, %139 : vector<1x128xf32>
    %c5_70 = arith.constant 5 : index
    %c0_71 = arith.constant 0 : index
    %141 = memref.load %arg3[%c5_70, %c0_71] : memref<6x3xf32, #tpu.memory_space<smem>>
    %142 = vector.broadcast %141 : f32 to vector<1x128xf32>
    %143 = arith.mulf %121, %142 : vector<1x128xf32>
    %144 = arith.addf %140, %143 : vector<1x128xf32>
    %c0_72 = arith.constant 0 : index
    %145 = memref.load %arg4[%c0_72] : memref<3xf32, #tpu.memory_space<smem>>
    %146 = vector.broadcast %145 : f32 to vector<1x128xf32>
    %147 = arith.addf %144, %146 : vector<1x128xf32>
    %c0_73 = arith.constant 0 : index
    %c1_74 = arith.constant 1 : index
    %148 = memref.load %arg3[%c0_73, %c1_74] : memref<6x3xf32, #tpu.memory_space<smem>>
    %149 = vector.broadcast %148 : f32 to vector<1x128xf32>
    %150 = arith.mulf %26, %149 : vector<1x128xf32>
    %c1_75 = arith.constant 1 : index
    %c1_76 = arith.constant 1 : index
    %151 = memref.load %arg3[%c1_75, %c1_76] : memref<6x3xf32, #tpu.memory_space<smem>>
    %152 = vector.broadcast %151 : f32 to vector<1x128xf32>
    %153 = arith.mulf %45, %152 : vector<1x128xf32>
    %154 = arith.addf %150, %153 : vector<1x128xf32>
    %c2_77 = arith.constant 2 : index
    %c1_78 = arith.constant 1 : index
    %155 = memref.load %arg3[%c2_77, %c1_78] : memref<6x3xf32, #tpu.memory_space<smem>>
    %156 = vector.broadcast %155 : f32 to vector<1x128xf32>
    %157 = arith.mulf %64, %156 : vector<1x128xf32>
    %158 = arith.addf %154, %157 : vector<1x128xf32>
    %c3_79 = arith.constant 3 : index
    %c1_80 = arith.constant 1 : index
    %159 = memref.load %arg3[%c3_79, %c1_80] : memref<6x3xf32, #tpu.memory_space<smem>>
    %160 = vector.broadcast %159 : f32 to vector<1x128xf32>
    %161 = arith.mulf %83, %160 : vector<1x128xf32>
    %162 = arith.addf %158, %161 : vector<1x128xf32>
    %c4_81 = arith.constant 4 : index
    %c1_82 = arith.constant 1 : index
    %163 = memref.load %arg3[%c4_81, %c1_82] : memref<6x3xf32, #tpu.memory_space<smem>>
    %164 = vector.broadcast %163 : f32 to vector<1x128xf32>
    %165 = arith.mulf %102, %164 : vector<1x128xf32>
    %166 = arith.addf %162, %165 : vector<1x128xf32>
    %c5_83 = arith.constant 5 : index
    %c1_84 = arith.constant 1 : index
    %167 = memref.load %arg3[%c5_83, %c1_84] : memref<6x3xf32, #tpu.memory_space<smem>>
    %168 = vector.broadcast %167 : f32 to vector<1x128xf32>
    %169 = arith.mulf %121, %168 : vector<1x128xf32>
    %170 = arith.addf %166, %169 : vector<1x128xf32>
    %c1_85 = arith.constant 1 : index
    %171 = memref.load %arg4[%c1_85] : memref<3xf32, #tpu.memory_space<smem>>
    %172 = vector.broadcast %171 : f32 to vector<1x128xf32>
    %173 = arith.addf %170, %172 : vector<1x128xf32>
    %c0_86 = arith.constant 0 : index
    %c2_87 = arith.constant 2 : index
    %174 = memref.load %arg3[%c0_86, %c2_87] : memref<6x3xf32, #tpu.memory_space<smem>>
    %175 = vector.broadcast %174 : f32 to vector<1x128xf32>
    %176 = arith.mulf %26, %175 : vector<1x128xf32>
    %c1_88 = arith.constant 1 : index
    %c2_89 = arith.constant 2 : index
    %177 = memref.load %arg3[%c1_88, %c2_89] : memref<6x3xf32, #tpu.memory_space<smem>>
    %178 = vector.broadcast %177 : f32 to vector<1x128xf32>
    %179 = arith.mulf %45, %178 : vector<1x128xf32>
    %180 = arith.addf %176, %179 : vector<1x128xf32>
    %c2_90 = arith.constant 2 : index
    %c2_91 = arith.constant 2 : index
    %181 = memref.load %arg3[%c2_90, %c2_91] : memref<6x3xf32, #tpu.memory_space<smem>>
    %182 = vector.broadcast %181 : f32 to vector<1x128xf32>
    %183 = arith.mulf %64, %182 : vector<1x128xf32>
    %184 = arith.addf %180, %183 : vector<1x128xf32>
    %c3_92 = arith.constant 3 : index
    %c2_93 = arith.constant 2 : index
    %185 = memref.load %arg3[%c3_92, %c2_93] : memref<6x3xf32, #tpu.memory_space<smem>>
    %186 = vector.broadcast %185 : f32 to vector<1x128xf32>
    %187 = arith.mulf %83, %186 : vector<1x128xf32>
    %188 = arith.addf %184, %187 : vector<1x128xf32>
    %c4_94 = arith.constant 4 : index
    %c2_95 = arith.constant 2 : index
    %189 = memref.load %arg3[%c4_94, %c2_95] : memref<6x3xf32, #tpu.memory_space<smem>>
    %190 = vector.broadcast %189 : f32 to vector<1x128xf32>
    %191 = arith.mulf %102, %190 : vector<1x128xf32>
    %192 = arith.addf %188, %191 : vector<1x128xf32>
    %c5_96 = arith.constant 5 : index
    %c2_97 = arith.constant 2 : index
    %193 = memref.load %arg3[%c5_96, %c2_97] : memref<6x3xf32, #tpu.memory_space<smem>>
    %194 = vector.broadcast %193 : f32 to vector<1x128xf32>
    %195 = arith.mulf %121, %194 : vector<1x128xf32>
    %196 = arith.addf %192, %195 : vector<1x128xf32>
    %c2_98 = arith.constant 2 : index
    %197 = memref.load %arg4[%c2_98] : memref<3xf32, #tpu.memory_space<smem>>
    %198 = vector.broadcast %197 : f32 to vector<1x128xf32>
    %199 = arith.addf %196, %198 : vector<1x128xf32>
    %200 = arith.maximumf %147, %173 : vector<1x128xf32>
    %201 = arith.maximumf %200, %199 : vector<1x128xf32>
    %202 = arith.subf %147, %201 : vector<1x128xf32>
    %203 = math.exp %202 : vector<1x128xf32>
    %204 = arith.subf %173, %201 : vector<1x128xf32>
    %205 = math.exp %204 : vector<1x128xf32>
    %206 = arith.subf %199, %201 : vector<1x128xf32>
    %207 = math.exp %206 : vector<1x128xf32>
    %208 = arith.addf %203, %205 : vector<1x128xf32>
    %209 = arith.addf %208, %207 : vector<1x128xf32>
    %210 = tpu.reciprocal %209 : vector<1x128xf32> -> vector<1x128xf32>
    %211 = arith.mulf %203, %210 : vector<1x128xf32>
    %c0_99 = arith.constant 0 : index
    %c0_100 = arith.constant 0 : index
    %c0_101 = arith.constant 0 : index
    %212 = vector.load %arg6[%c0_99, %c0_100, %c0_101] : memref<3x1x128xf32, #tpu.memory_space<vmem>>, vector<1x1x128xf32>
    %213 = vector.shape_cast %212 : vector<1x1x128xf32> to vector<1x128xf32>
    %214 = vector.shape_cast %211 : vector<1x128xf32> to vector<1x1x128xf32>
    tpu.vector_store %arg6[%c0_99, %c0_100, %c0_101], %214 {strides = array<i32>} : memref<3x1x128xf32, #tpu.memory_space<vmem>>, vector<1x1x128xf32>,
    %215 = arith.mulf %205, %210 : vector<1x128xf32>
    %c1_102 = arith.constant 1 : index
    %c0_103 = arith.constant 0 : index
    %c0_104 = arith.constant 0 : index
    %216 = vector.load %arg6[%c1_102, %c0_103, %c0_104] : memref<3x1x128xf32, #tpu.memory_space<vmem>>, vector<1x1x128xf32>
    %217 = vector.shape_cast %216 : vector<1x1x128xf32> to vector<1x128xf32>
    %218 = vector.shape_cast %215 : vector<1x128xf32> to vector<1x1x128xf32>
    tpu.vector_store %arg6[%c1_102, %c0_103, %c0_104], %218 {strides = array<i32>} : memref<3x1x128xf32, #tpu.memory_space<vmem>>, vector<1x1x128xf32>,
    %219 = arith.mulf %207, %210 : vector<1x128xf32>
    %c2_105 = arith.constant 2 : index
    %c0_106 = arith.constant 0 : index
    %c0_107 = arith.constant 0 : index
    %220 = vector.load %arg6[%c2_105, %c0_106, %c0_107] : memref<3x1x128xf32, #tpu.memory_space<vmem>>, vector<1x1x128xf32>
    %221 = vector.shape_cast %220 : vector<1x1x128xf32> to vector<1x128xf32>
    %222 = vector.shape_cast %219 : vector<1x128xf32> to vector<1x1x128xf32>
    tpu.vector_store %arg6[%c2_105, %c0_106, %c0_107], %222 {strides = array<i32>} : memref<3x1x128xf32, #tpu.memory_space<vmem>>, vector<1x1x128xf32>,
    return
  }
  func.func @transform_0(%arg0: i32) -> (i32, i32) {
    %c0_i32 = arith.constant 0 : i32
    %c0_i32_0 = arith.constant 0 : i32
    %c0_i32_1 = arith.constant 0 : i32
    return %c0_i32, %c0_i32_0 : i32, i32
  }
  func.func @transform_1(%arg0: i32) -> i32 {
    %c0_i32 = arith.constant 0 : i32
    %c0_i32_0 = arith.constant 0 : i32
    return %c0_i32 : i32
  }
  func.func @transform_2(%arg0: i32) -> (i32, i32) {
    %c0_i32 = arith.constant 0 : i32
    %c0_i32_0 = arith.constant 0 : i32
    %c0_i32_1 = arith.constant 0 : i32
    return %c0_i32, %c0_i32_0 : i32, i32
  }
  func.func @transform_3(%arg0: i32) -> i32 {
    %c0_i32 = arith.constant 0 : i32
    %c0_i32_0 = arith.constant 0 : i32
    return %c0_i32 : i32
  }
  func.func @transform_4(%arg0: i32) -> (i32, i32, i32) {
    %c0_i32 = arith.constant 0 : i32
    %c0_i32_0 = arith.constant 0 : i32
    %c0_i32_1 = arith.constant 0 : i32
    return %c0_i32, %arg0, %c0_i32_0 : i32, i32, i32
  }
  func.func @transform_5(%arg0: i32) -> (i32, i32, i32) {
    %c0_i32 = arith.constant 0 : i32
    %c0_i32_0 = arith.constant 0 : i32
    %c0_i32_1 = arith.constant 0 : i32
    return %c0_i32, %arg0, %c0_i32_0 : i32, i32, i32
  }
}

</mosaic_0001>

<bundles_post_ra>
// kernel: tpu_custom_call.1
= control target key start
LH: loop header
LB: loop body
LE: loop exit
PB: predicated region body
PF: predicated region fallthrough
CT: control target
= control target key end

     0   :  { %10 = vsyncpa [#allocation4], 0  ;;  %s692_s0 = inlined_call_operand.vmem [shape: f32[4,6], index: 0, kind: input, shape index: {}]   ;;  %s693_s1 = inlined_call_operand.vmem [shape: f32[6], index: 1, kind: input, shape index: {}]   ;;  %s694_s2 = inlined_call_operand.vmem [shape: f32[6,3], index: 2, kind: input, shape index: {}]   ;;  %s695_s3 = inlined_call_operand.vmem [shape: f32[3], index: 3, kind: input, shape index: {}]   ;;  %s696_s4 = inlined_call_operand.vmem [shape: f32[4,1,128], index: 4, kind: input, shape index: {}]   ;;  %s697_s5 = inlined_call_operand.hbm [shape: f32[3,1,128], index: 5, kind: output, shape index: {}]  }
   0x1   :  { %11 = vsyncpa [#allocation6], 0 }
   0x2   :  { %12 = vsyncpa [#allocation9], 0  ;;  %s30_s20 = sshll.u32 %s693_s1, 4  ;;  %s31_s20 = int_to_ptr.vmem [resolvable:$true] %s30_s20 }
   0x3   :  { %13 = vsyncpa [#allocation3], 0  ;;  %s20_s23 = sshll.u32 %s692_s0, 4  ;;  %s386_s24 = scalar_lea.vmem %s31_s20, 16  ;;  %s21_s23 = int_to_ptr.vmem [resolvable:$true] %s20_s23 }
   0x4   :  { %p387_p0 = scmp.ne.s32.totalorder %s31_s20, %s386_s24  ;;  %p391_p1 = scmp.lt.s32.totalorder %s31_s20, %s31_s20 }
   0x5   :  { %p392_p2 = scmp.lt.s32.totalorder %s386_s24, %s386_s24 }
   0x7   :  { %p393_p3 = por %p392_p2, %p391_p1 }
   0x9   :  { %p394_p4 = pnand %p393_p3, %p387_p0 }
   0xb   :  { %397 = shalt.err (!%p394_p4)
}
   0xc   :  { %s464_s25 = smov [#allocation5]   ;;  %s398_s26 = scalar_lea.vmem %s21_s23, 64 }
   0xd   :  { %33 = dma.vmem_to_smem %s31_s20, 16, %s464_s25, [#allocation6]  }
   0xe   :  { %p399_p5 = scmp.ne.s32.totalorder %s21_s23, %s398_s26  ;;  %p403_p6 = scmp.lt.s32.totalorder %s21_s23, %s21_s23 }
   0xf   :  { %p404_p7 = scmp.lt.s32.totalorder %s398_s26, %s398_s26 }
  0x11   :  { %p405_p8 = por %p404_p7, %p403_p6 }
  0x13   :  { %p406_p9 = pnand %p405_p8, %p399_p5 }
  0x15   :  { %409 = shalt.err (!%p406_p9)
}
  0x16   :  { %s465_s1 = smov [#allocation2]   ;;  %s40_s28 = sshll.u32 %s694_s2, 4  ;;  %s41_s28 = int_to_ptr.vmem [resolvable:$true] %s40_s28 }
  0x17   :  { %23 = dma.vmem_to_smem %s21_s23, 64, %s465_s1, [#allocation4]  }
  0x18   :  { %s50_s6 = sshll.u32 %s695_s3, 4  ;;  %s410_s7 = scalar_lea.vmem %s41_s28, 128  ;;  %s51_s6 = int_to_ptr.vmem [resolvable:$true] %s50_s6 }
  0x19   :  { %p411_p10 = scmp.ne.s32.totalorder %s41_s28, %s410_s7  ;;  %p415_p11 = scmp.lt.s32.totalorder %s41_s28, %s41_s28 }
  0x1a   :  { %p416_p12 = scmp.lt.s32.totalorder %s410_s7, %s410_s7 }
  0x1c   :  { %p417_p13 = por %p416_p12, %p415_p11 }
  0x1e   :  { %p418_p0 = pnand %p417_p13, %p411_p10 }
  0x20   :  { %421 = shalt.err (!%p418_p0)
}
  0x21   :  { %s466_s8 = smov [#allocation7]   ;;  %s422_s9 = scalar_lea.vmem %s51_s6, 16 }
  0x22   :  { %43 = dma.vmem_to_smem %s41_s28, 128, %s466_s8, [#allocation6]  }
  0x23   :  { %p423_p1 = scmp.ne.s32.totalorder %s51_s6, %s422_s9  ;;  %p427_p2 = scmp.lt.s32.totalorder %s51_s6, %s51_s6 }
  0x24   :  { %p428_p3 = scmp.lt.s32.totalorder %s422_s9, %s422_s9 }
  0x26   :  { %p429_p4 = por %p428_p3, %p427_p2 }
  0x28   :  { %p430_p5 = pnand %p429_p4, %p423_p1 }
  0x2a   :  { %433 = shalt.err (!%p430_p5)
}
  0x2b   :  { %s467_s2 = smov [#allocation8]  }
  0x2c   :  { %53 = dma.vmem_to_smem %s51_s6, 16, %s467_s2, [#allocation9]  }
  0x2d   :  { %456 = dma.done.wait [#allocation4], 64  }
  0x2e   :  { %457 = vsyncadd [#allocation4], 4294967232 }
  0x2f   :  { %458 = dma.done.wait [#allocation6], 144  }
  0x30   :  { %459 = vsyncadd [#allocation6], 4294967152 }
  0x31   :  { %460 = dma.done.wait [#allocation9], 16  }
  0x32   :  { %461 = vsyncadd [#allocation9], 4294967280 }
  0x33   :  { %68 = sfence }
  0x34   :  { %s76_s3 = sld [smem:[#allocation2]]  ;;  %v516_v0 = vld [vmem:[%s696_s4] sm:$0x1]  ;;  %s315_s16 = sld [smem:[#allocation2 + $0x1]]  ;;  %v523_v1 = vld [vmem:[%s696_s4 + $0x1] sm:$0x1] }
  0x35   :  { %s312_s10 = sld [smem:[#allocation2 + $0x80]]  ;;  %s316_s19 = sld [smem:[#allocation2 + $0x81]]  ;;  %v528_v2 = vld [vmem:[%s696_s4 + $0x2] sm:$0x1]  ;;  %v537_v3 = vld [vmem:[%s696_s4 + $0x3] sm:$0x1] }
  0x36   :  { %s313_s11 = sld [smem:[#allocation2 + $0x100]]  ;;  %s317_s20 = sld [smem:[#allocation2 + $0x101]] }
  0x37   :  { %s314_s12 = sld [smem:[#allocation2 + $0x180]]  ;;  %s530_s23 = sld [smem:[#allocation2 + $0x181]] }
  0x38   :  { %s518_s15 = sld [smem:[#allocation5]]  ;;  %s532_s24 = sld [smem:[#allocation5 + $0x1]] }
  0x39   :  { %s539_s1 = sld [smem:[#allocation2 + $0x2]]  ;;  %s549_s4 = sld [smem:[#allocation2 + $0x3]] }
  0x3a   :  { %s541_s0 = sld [smem:[#allocation2 + $0x82]]  ;;  %v77_v4 = vstv %s76_s3  ;;  %v96_v12 = vstv %s315_s16  ;;  %s553_s29 = sld [smem:[#allocation2 + $0x83]] }
  0x3b   :  { %v80_v5 = vstv %s312_s10  ;;  %s543_s27 = sld [smem:[#allocation2 + $0x102]]  ;;  %v78_v6 = vmul.f32 %v77_v4, %v516_v0  ;;  %s555_s30 = sld [smem:[#allocation2 + $0x103]]  ;;  %v97_v14 = vmul.f32 %v96_v12, %v516_v0  ;;  %v99_v15 = vstv %s316_s19 }
  0x3c   :  { %s545_s28 = sld [smem:[#allocation2 + $0x182]]  ;;  %v81_v7 = vmul.f32 %v523_v1, %v80_v5  ;;  %v84_v8 = vstv %s313_s11  ;;  %v103_v16 = vstv %s317_s20  ;;  %s560_s7 = sld [smem:[#allocation2 + $0x183]]  ;;  %v100_v18 = vmul.f32 %v523_v1, %v99_v15 }
  0x3d   :  { %v88_v9 = vstv %s314_s12  ;;  %v85_v10 = vmul.f32 %v528_v2, %v84_v8  ;;  %s558_s6 = sld [smem:[#allocation5 + $0x2]]  ;;  %v104_v19 = vmul.f32 %v528_v2, %v103_v16  ;;  %v107_v20 = vstv %s530_s23  ;;  %s566_s8 = sld [smem:[#allocation2 + $0x4]] }
  0x3e   :  { %v89_v11 = vmul.f32 %v537_v3, %v88_v9  ;;  %v82_v13 = vadd.f32 %v81_v7, %v78_v6  ;;  %v92_v17 = vstv %s518_s15  ;;  %s568_s9 = sld [smem:[#allocation2 + $0x84]]  ;;  %v108_v22 = vmul.f32 %v537_v3, %v107_v20  ;;  %s583_s10 = sld [smem:[#allocation5 + $0x3]] }
  0x3f   :  { %v115_v23 = vstv %s539_s1  ;;  %s573_s2 = sld [smem:[#allocation2 + $0x104]]  ;;  %v101_v25 = vadd.f32 %v100_v18, %v97_v14  ;;  %v111_v30 = vstv %s532_s24  ;;  %s585_s11 = sld [smem:[#allocation2 + $0x5]]  ;;  %v134_v36 = vstv %s549_s4 }
  0x40   :  { %v86_v21 = vadd.f32 %v85_v10, %v82_v13  ;;  %v118_v24 = vstv %s541_s0  ;;  %s575_s3 = sld [smem:[#allocation2 + $0x184]]  ;;  %v116_v26 = vmul.f32 %v115_v23, %v516_v0  ;;  %s589_s12 = sld [smem:[#allocation2 + $0x85]]  ;;  %v135_v38 = vmul.f32 %v134_v36, %v516_v0 }
  0x41   :  { %v119_v27 = vmul.f32 %v523_v1, %v118_v24  ;;  %v122_v28 = vstv %s543_s27  ;;  %v105_v33 = vadd.f32 %v104_v19, %v101_v25  ;;  %v137_v39 = vstv %s553_s29  ;;  %s594_s13 = sld [smem:[#allocation2 + $0x105]]  ;;  %s603_s15 = sld [smem:[#allocation5 + $0x4]] }
  0x42   :  { %v90_v29 = vadd.f32 %v89_v11, %v86_v21  ;;  %v123_v31 = vmul.f32 %v528_v2, %v122_v28  ;;  %v126_v32 = vstv %s545_s28  ;;  %v141_v40 = vstv %s555_s30  ;;  %s596_s14 = sld [smem:[#allocation2 + $0x185]]  ;;  %s606_s16 = sld [smem:[#allocation7]] }
  0x43   :  { %v120_v34 = vadd.f32 %v119_v27, %v116_v26  ;;  %v127_v35 = vmul.f32 %v537_v3, %v126_v32  ;;  %v109_v41 = vadd.f32 %v108_v22, %v105_v33  ;;  %v138_v43 = vmul.f32 %v523_v1, %v137_v39  ;;  %s612_s17 = sld [smem:[#allocation5 + $0x5]]  ;;  %s614_s18 = sld [smem:[#allocation7 + $0x1]] }
  0x44   :  { %v93_v37 = vadd.f32 %v92_v17, %v90_v29  ;;  %v142_v44 = vmul.f32 %v528_v2, %v141_v40  ;;  %v130_v45 = vstv %s558_s6  ;;  %v145_v46 = vstv %s560_s7  ;;  %s617_s19 = sld [smem:[#allocation7 + $0x80]]  ;;  %s627_s22 = sld [smem:[#allocation7 + $0x81]] }
  0x45   :  { %v124_v42 = vadd.f32 %v123_v31, %v120_v34  ;;  %v153_v47 = vstv %s566_s8  ;;  %v112_v48 = vadd.f32 %v111_v30, %v109_v41  ;;  %v139_v50 = vadd.f32 %v138_v43, %v135_v38  ;;  %s619_s20 = sld [smem:[#allocation7 + $0x100]]  ;;  %s630_s23 = sld [smem:[#allocation7 + $0x101]] }
  0x46   :  { %366 = vtanh.f32 %v93_v37  ;;  %v146_v51 = vmul.f32 %v537_v3, %v145_v46  ;;  %v154_v52 = vmul.f32 %v153_v47, %v516_v0  ;;  %v156_v53 = vstv %s568_s9  ;;  %s625_s21 = sld [smem:[#allocation7 + $0x180]]  ;;  %s632_s24 = sld [smem:[#allocation7 + $0x181]] }
  0x47   :  { %v128_v49 = vadd.f32 %v127_v35, %v124_v42  ;;  %v160_v54 = vstv %s573_s2  ;;  %v164_v55 = vstv %s575_s3  ;;  %368 = vtanh.f32 %v112_v48  ;;  %s637_s25 = sld [smem:[#allocation7 + $0x2]]  ;;  %s655_s27 = sld [smem:[#allocation7 + $0x200]] }
  0x48   :  { %v143_v57 = vadd.f32 %v142_v44, %v139_v50  ;;  %v157_v58 = vmul.f32 %v523_v1, %v156_v53  ;;  %v149_v59 = vstv %s583_s10  ;;  %v161_v60 = vmul.f32 %v528_v2, %v160_v54  ;;  %s639_s26 = sld [smem:[#allocation7 + $0x82]]  ;;  %s660_s28 = sld [smem:[#allocation7 + $0x201]] }
  0x49   :  { %v131_v56 = vadd.f32 %v130_v45, %v128_v49  ;;  %v165_v61 = vmul.f32 %v537_v3, %v164_v55  ;;  %v172_v62 = vstv %s585_s11  ;;  %v175_v6 = vstv %s589_s12  ;;  %s643_s1 = sld [smem:[#allocation7 + $0x102]]  ;;  %s667_s29 = sld [smem:[#allocation7 + $0x280]] }
  0x4a   :  { %v147_v63 = vadd.f32 %v146_v51, %v143_v57  ;;  %v158_v4 = vadd.f32 %v157_v58, %v154_v52  ;;  %v173_v5 = vmul.f32 %v172_v62, %v516_v0  ;;  %v179_v7 = vstv %s594_s13  ;;  %s648_s0 = sld [smem:[#allocation7 + $0x182]]  ;;  %s669_s30 = sld [smem:[#allocation7 + $0x281]] }
  0x4b   :  { %370 = vtanh.f32 %v131_v56  ;;  %v183_v8 = vstv %s596_s14  ;;  %v176_v11 = vmul.f32 %v523_v1, %v175_v6  ;;  %v180_v0 = vmul.f32 %v528_v2, %v179_v7  ;;  %s662_s4 = sld [smem:[#allocation7 + $0x202]]  ;;  %s672_s7 = sld [smem:[#allocation8]] }
  0x4c   :  { %v150_v9 = vadd.f32 %v149_v59, %v147_v63  ;;  %v162_v10 = vadd.f32 %v161_v60, %v158_v4  ;;  %v168_v12 = vstv %s603_s15  ;;  %v184_v13 = vmul.f32 %v537_v3, %v183_v8  ;;  %s357_s6 = sld [smem:[#allocation7 + $0x282]]  ;;  %s351_s8 = sld [smem:[#allocation8 + $0x1]] }
  0x4d   :  { %v177_v15 = vadd.f32 %v176_v11, %v173_v5  ;;  %v191_v16 = vstv %s606_s16  ;;  %v187_v1 = vstv %s612_s17  ;;  %v217_v18 = vstv %s614_s18  ;;  %s358_s9 = sld [smem:[#allocation8 + $0x2]]  ;;  %s468_s2 = smov [#allocation10]  }
  0x4e   :  { %372 = vtanh.f32 %v150_v9  ;;  %v166_v14 = vadd.f32 %v165_v61, %v162_v10  ;;  %v194_v20 = vstv %s617_s19  ;;  %v198_v21 = vstv %s619_s20  ;;  %s295_s3 = sshll.u32 %s468_s2, 4  ;;  %s296_s3 = int_to_ptr.vmem [resolvable:$true] %s295_s3 }
  0x4f   :  { %v181_v2 = vadd.f32 %v180_v0, %v177_v15  ;;  %v202_v3 = vstv %s625_s21  ;;  %v220_v24 = vstv %s627_s22  ;;  %v224_v27 = vstv %s630_s23  ;;  %s434_s10 = scalar_lea.vmem %s296_s3, 48  ;;  %s438_s11 = scalar_lea.vmem %s296_s3, 64 }
  0x50   :  { %v367_v17 = vpop.eup %366  ;;  %v169_v19 = vadd.f32 %v168_v12, %v166_v14  ;;  %v228_v28 = vstv %s632_s24  ;;  %v243_v31 = vstv %s637_s25  ;;  %v246_v32 = vstv %s639_s26  ;;  %p435_p6 = scmp.ne.s32.totalorder %s296_s3, %s434_s10  ;;  %p439_p7 = scmp.lt.s32.totalorder %s296_s3, %s296_s3 }
  0x51   :  { %v192_v22 = vmul.f32 %v367_v17, %v191_v16  ;;  %v218_v23 = vmul.f32 %v367_v17, %v217_v18  ;;  %v369_v25 = vpop.eup %368  ;;  %v185_v26 = vadd.f32 %v184_v13, %v181_v2  ;;  %v244_v35 = vmul.f32 %v367_v17, %v243_v31  ;;  %p440_p8 = scmp.lt.s32.totalorder %s438_s11, %s434_s10 }
  0x52   :  { %374 = vtanh.f32 %v169_v19  ;;  %v195_v29 = vmul.f32 %v369_v25, %v194_v20  ;;  %v221_v30 = vmul.f32 %v369_v25, %v220_v24  ;;  %v247_v36 = vmul.f32 %v369_v25, %v246_v32 }
  0x53   :  { %v188_v34 = vadd.f32 %v187_v1, %v185_v26  ;;  %v250_v37 = vstv %s643_s1  ;;  %v254_v44 = vstv %s648_s0  ;;  %v206_v52 = vstv %s655_s27  ;;  %p441_p9 = por %p440_p8, %p439_p7 }
  0x54   :  { %v196_v38 = vadd.f32 %v195_v29, %v192_v22  ;;  %v222_v40 = vadd.f32 %v221_v30, %v218_v23  ;;  %v248_v42 = vadd.f32 %v247_v36, %v244_v35  ;;  %v232_v53 = vstv %s660_s28 }
  0x55   :  { %v371_v33 = vpop.eup %370  ;;  %376 = vtanh.f32 %v188_v34  ;;  %v258_v54 = vstv %s662_s4  ;;  %v210_v62 = vstv %s667_s29  ;;  %v236_v63 = vstv %s669_s30  ;;  %p442_p10 = pnand %p441_p9, %p435_p6 }
  0x56   :  { %v199_v39 = vmul.f32 %v371_v33, %v198_v21  ;;  %v225_v41 = vmul.f32 %v371_v33, %v224_v27  ;;  %v251_v43 = vmul.f32 %v371_v33, %v250_v37  ;;  %v262_v4 = vstv %s357_s6 }
  0x57   :  { %v214_v0 = vstv %s672_s7  ;;  %v240_v12 = vstv %s351_s8  ;;  %v266_v13 = vstv %s358_s9 }
  0x58   :  { %v200_v45 = vadd.f32 %v199_v39, %v196_v38  ;;  %v226_v46 = vadd.f32 %v225_v41, %v222_v40  ;;  %v373_v47 = vpop.eup %372  ;;  %v252_v48 = vadd.f32 %v251_v43, %v248_v42 }
  0x59   :  { %v203_v49 = vmul.f32 %v373_v47, %v202_v3  ;;  %v229_v50 = vmul.f32 %v373_v47, %v228_v28  ;;  %v255_v51 = vmul.f32 %v373_v47, %v254_v44 }
  0x5b   :  { %v204_v55 = vadd.f32 %v203_v49, %v200_v45  ;;  %v230_v56 = vadd.f32 %v229_v50, %v226_v46  ;;  %v256_v57 = vadd.f32 %v255_v51, %v252_v48 }
  0x5c   :  { %v375_v58 = vpop.eup %374 }
  0x5d   :  { %v207_v59 = vmul.f32 %v375_v58, %v206_v52  ;;  %v233_v60 = vmul.f32 %v375_v58, %v232_v53  ;;  %v259_v61 = vmul.f32 %v375_v58, %v258_v54 }
  0x5f   :  { %v208_v5 = vadd.f32 %v207_v59, %v204_v55  ;;  %v234_v6 = vadd.f32 %v233_v60, %v230_v56  ;;  %v260_v7 = vadd.f32 %v259_v61, %v256_v57  ;;  %v377_v8 = vpop.eup %376 }
  0x60   :  { %v211_v9 = vmul.f32 %v377_v8, %v210_v62  ;;  %v237_v10 = vmul.f32 %v377_v8, %v236_v63  ;;  %v263_v11 = vmul.f32 %v377_v8, %v262_v4 }
  0x62   :  { %v212_v14 = vadd.f32 %v211_v9, %v208_v5  ;;  %v238_v15 = vadd.f32 %v237_v10, %v234_v6  ;;  %v264_v16 = vadd.f32 %v263_v11, %v260_v7 }
  0x64   :  { %v215_v17 = vadd.f32 %v214_v0, %v212_v14  ;;  %v241_v1 = vadd.f32 %v240_v12, %v238_v15  ;;  %v267_v18 = vadd.f32 %v266_v13, %v264_v16 }
  0x66   :  { %v268_v19 = vmax.f32 %v215_v17, %v241_v1 }
  0x68   :  { %v269_v2 = vmax.f32 %v268_v19, %v267_v18 }
  0x6a   :  { %v270_v20 = vsub.f32 %v215_v17, %v269_v2  ;;  %v273_v21 = vsub.f32 %v241_v1, %v269_v2  ;;  %v276_v22 = vsub.f32 %v267_v18, %v269_v2 }
  0x6c   :  { %v271_v3 = vmul.f32 1.442695, %v270_v20  ;;  %v274_v23 = vmul.f32 1.442695, %v273_v21  ;;  %v277_v24 = vmul.f32 1.442695, %v276_v22 }
  0x6e   :  { %378 = vpow2.f32 %v271_v3 }
  0x6f   :  { %380 = vpow2.f32 %v274_v23 }
  0x70   :  { %382 = vpow2.f32 %v277_v24 }
  0x78   :  { %v379_v25 = vpop.eup %378 }
  0x79   :  { %v381_v26 = vpop.eup %380 }
  0x7a   :  { %v383_v27 = vpop.eup %382  ;;  %v279_v28 = vadd.f32 %v381_v26, %v379_v25 }
  0x7c   :  { %v280_v29 = vadd.f32 %v383_v27, %v279_v28 }
  0x7e   :  { %384 = vrcp.f32 %v280_v29 }
  0x88   :  { %v385_v30 = vpop.eup %384 }
  0x89   :  { %v282_v31 = vmul.f32 %v385_v30, %v379_v25  ;;  %v284_v32 = vmul.f32 %v385_v30, %v381_v26  ;;  %v287_v33 = vmul.f32 %v385_v30, %v383_v27 }
  0x8b   :  { %283 = vst [vmem:[#allocation10] sm:$0x1] %v282_v31  ;;  %286 = vst [vmem:[#allocation10 + $0x1] sm:$0x1] %v284_v32 }
  0x8c   :  { %289 = vst [vmem:[#allocation10 + $0x2] sm:$0x1] %v287_v33 }
  0x8d   :  { %445 = shalt.err (!%p442_p10)
}
  0x8e   :  { %s446_s14 = scalar_lea.hbm %s697_s5, 48 }
  0x8f   :  { %p447_p11 = scmp.ne.s32.totalorder %s697_s5, %s446_s14  ;;  %p450_p12 = scmp.lt.u32.totalorder %s446_s14, %s697_s5 }
  0x91   :  { %p452_p13 = pnand %p450_p12, %p447_p11 }
  0x93   :  { %455 = shalt.err (!%p452_p13)
}
  0x94   :  { %s469_s19 = smov 16   ;;  %s470_s20 = smov 1  }
  0x95   :  { %301 = dma.vmem_to_hbm [thread:$0]  %s296_s3, 48, %s697_s5, [#allocation3], %s469_s19, %s469_s19, %s470_s20  }
  0x96   :  { %462 = dma.done.wait [#allocation3], 48  }
  0x97   :  { %463 = vsyncadd [#allocation3], 4294967248 }
  0x98   :  { %305 = vsyncpa [#allocation3], 1 }
  0x99   :  { %306 = vsyncpa [#allocation4], 1 }
  0x9a   :  { %307 = vsyncpa [#allocation6], 1 }
  0x9b   :  { %308 = vsyncpa [#allocation9], 1 }

</bundles_post_ra>
